<compile_context>
chip_gen: v6e
topology: v6e:2x2x1
jax: 0.10.0
libtpu: 0.0.40
codegen_flags: <defaults>
</compile_context>

<pallas_src>
import math

import jax
import jax.numpy as jnp
from jax import lax
from jax.experimental import pallas as pl
from jax.experimental.pallas import tpu as pltpu

N_EMBD = 384  # fixed by the PyTorch module


def _pick_q_tile(T: int) -> int:
    # Largest "nice" query tile that divides T; fall back to the full length.
    for cand in (512, 256, 128, 64, 32, 16, 8):
        if T >= cand and T % cand == 0:
            return cand
    return T


def head_forward(x, wk, wq, wv):
    """x: (B, T, C) f32; wk/wq/wv: (C, H) f32 (y = x @ W) -> (B, T, H) f32."""
    B, T, C = x.shape
    H = wk.shape[1]
    assert C == N_EMBD

    # Fuse the three projections into one (C, 3H) weight (order: q, k, v) and
    # pre-cast to bf16 (halves the weight DMA, feeds the MXU fast path).
    w_qkv = jnp.concatenate([wq, wk, wv], axis=1).astype(jnp.bfloat16)

    tq = _pick_q_tile(T)
    nq = T // tq
    scale = 1.0 / math.sqrt(C)  # PyTorch module scales by sqrt(n_embd), not sqrt(H)

    def kernel(x_ref, w_ref, o_ref, q_s, k_s, v_s):
        qi = pl.program_id(1)

        # Compute q/k/v for this batch element once, on the first query tile.
        @pl.when(qi == 0)
        def _():
            xb = x_ref[0].astype(jnp.bfloat16)                      # (T, C)
            qkv = jnp.dot(xb, w_ref[...],                           # fused projection
                          preferred_element_type=jnp.float32)       # (T, 3H)
            q_s[...] = qkv[:, :H] * scale                           # scale folded into q
            k_s[...] = qkv[:, H:2 * H].astype(jnp.bfloat16)
            v_s[...] = qkv[:, 2 * H:].astype(jnp.bfloat16)

        # Attention for this query tile.
        start = pl.multiple_of(qi * tq, tq)
        q = q_s[pl.ds(start, tq), :].astype(jnp.bfloat16)           # (TQ, H), pre-scaled
        k = k_s[...]                                                # (T, H)
        v = v_s[...]                                                # (T, H)

        # q @ k^T as an NT contraction -- no materialized transpose.
        s = lax.dot_general(q, k, (((1,), (1,)), ((), ())),
                            preferred_element_type=jnp.float32)     # (TQ, T)

        m = jnp.max(s, axis=-1, keepdims=True)
        e = jnp.exp(s - m)                                          # unnormalized probs
        denom = jnp.sum(e, axis=-1, keepdims=True)                  # (TQ, 1)

        out = jnp.dot(e.astype(jnp.bfloat16), v,
                      preferred_element_type=jnp.float32)           # (TQ, H)
        # Deferred softmax normalization on the small output; reciprocal -> EUP.
        o_ref[0] = (out * pl.reciprocal(denom, approx=True)).astype(o_ref.dtype)

    return pl.pallas_call(
        kernel,
        out_shape=jax.ShapeDtypeStruct((B, T, H), x.dtype),
        grid_spec=pltpu.PrefetchScalarGridSpec(
            num_scalar_prefetch=0,
            grid=(B, nq),
            in_specs=[
                # Full-sequence x block: same block index across q tiles, so it
                # is not re-DMA'd between tiles of the same batch element.
                pl.BlockSpec((1, T, C), lambda b, qi: (b, 0, 0)),
                pl.BlockSpec((C, 3 * H), lambda b, qi: (0, 0)),
            ],
            out_specs=pl.BlockSpec((1, tq, H), lambda b, qi: (b, qi, 0)),
            scratch_shapes=[
                pltpu.VMEM((T, H), jnp.float32),    # q (pre-scaled)
                pltpu.VMEM((T, H), jnp.bfloat16),   # k
                pltpu.VMEM((T, H), jnp.bfloat16),   # v
            ],
        ),
        compiler_params=pltpu.CompilerParams(
            # Batch axis parallel (megacore); the q-tile axis carries the q/k/v
            # scratch state so it must stay sequential.
            dimension_semantics=("parallel", "arbitrary"),
            vmem_limit_bytes=32 * 1024 * 1024,
        ),
    )(x, w_qkv)


def _reference(x, wk, wq, wv):
    k = x @ wk
    q = x @ wq
    v = x @ wv
    scores = jnp.einsum("btd,bsd->bts", q, k) / math.sqrt(N_EMBD)
    p = jax.nn.softmax(scores, axis=-1)
    return jnp.einsum("bts,bsd->btd", p, v)


if __name__ == "__main__":
    key = jax.random.PRNGKey(0)
    B, T, C = 2, 8, N_EMBD
    head_size = 64

    kx, kk, kq, kv = jax.random.split(key, 4)
    x = jax.random.normal(kx, (B, T, C), dtype=jnp.float32)

    # Deterministic init mimicking nn.Linear (uniform in +/- 1/sqrt(in_features)),
    # stored as (in_features, out_features) = (C, head_size).
    bound = 1.0 / math.sqrt(C)
    wk = jax.random.uniform(kk, (C, head_size), jnp.float32, -bound, bound)
    wq = jax.random.uniform(kq, (C, head_size), jnp.float32, -bound, bound)
    wv = jax.random.uniform(kv, (C, head_size), jnp.float32, -bound, bound)

    out = head_forward(x, wk, wq, wv)
    out = jax.block_until_ready(out)

    ref = _reference(x, wk, wq, wv)
    assert out.shape == (B, T, head_size)
    # bf16 MXU inputs with f32 accumulation -> looser tolerance vs. f32 reference.
    assert jnp.allclose(out, ref, atol=2e-2, rtol=2e-2), "mismatch vs reference"

    print("KERNEL_OK")
</pallas_src>

<mosaic_0001>
module attributes {stable_mosaic.version = 11 : i64} {
  func.func @kernel(%arg0: i32, %arg1: i32, %arg2: memref<1x8x384xf32, #tpu.memory_space<vmem>>, %arg3: memref<384x192xbf16, #tpu.memory_space<vmem>>, %arg4: memref<1x8x64xf32, #tpu.memory_space<vmem>>, %arg5: memref<8x64xf32, #tpu.memory_space<vmem>>, %arg6: memref<8x64xbf16, #tpu.memory_space<vmem>>, %arg7: memref<8x64xbf16, #tpu.memory_space<vmem>>) attributes {dimension_semantics = [#tpu.dimension_semantics<parallel>, #tpu.dimension_semantics<arbitrary>], iteration_bounds = array<i64: 2, 1>, scalar_prefetch = 0 : i64, scratch_operands = 3 : i64, tpu.core_type = #tpu.core_type<tc>, window_params = [{transform_indices = @transform_0, window_bounds = array<i64: 1, 8, 384>}, {pipeline_mode = #tpu.pipeline_mode<synchronous>, transform_indices = @transform_1, window_bounds = array<i64: 384, 192>}, {transform_indices = @transform_2, window_bounds = array<i64: 1, 8, 64>}]} {
    %c0_i32 = arith.constant 0 : i32
    %0 = arith.cmpi eq, %arg1, %c0_i32 : i32
    %1 = arith.extui %0 : i1 to i32
    %c0_i32_0 = arith.constant 0 : i32
    %2 = arith.cmpi ne, %1, %c0_i32_0 : i32
    scf.if %2 {
      %c0_11 = arith.constant 0 : index
      %c0_12 = arith.constant 0 : index
      %c0_13 = arith.constant 0 : index
      %26 = vector.load %arg2[%c0_11, %c0_12, %c0_13] : memref<1x8x384xf32, #tpu.memory_space<vmem>>, vector<1x8x384xf32>
      %27 = vector.shape_cast %26 : vector<1x8x384xf32> to vector<8x384xf32>
      %28 = arith.truncf %27 : vector<8x384xf32> to vector<8x384xbf16>
      %c0_14 = arith.constant 0 : index
      %c0_15 = arith.constant 0 : index
      %29 = vector.load %arg3[%c0_14, %c0_15] : memref<384x192xbf16, #tpu.memory_space<vmem>>, vector<384x192xbf16>
      %cst_16 = arith.constant dense<0.000000e+00> : vector<8x192xf32>
      %30 = tpu.matmul %28, %29, %cst_16 {dimension_numbers = #tpu.dot_dimension_numbers<[1], [0], [0], [1], [0, 0, 1, 1], [], []>} : vector<8x384xbf16>, vector<384x192xbf16>, vector<8x192xf32> -> vector<8x192xf32>
      %31 = vector.extract_strided_slice %30 {offsets = [0, 0], sizes = [8, 64], strides = [1, 1]} : vector<8x192xf32> to vector<8x64xf32>
      %cst_17 = arith.constant 0.0510310382 : f32
      %32 = vector.broadcast %cst_17 : f32 to vector<8x64xf32>
      %33 = arith.mulf %31, %32 : vector<8x64xf32>
      %c0_18 = arith.constant 0 : index
      %c0_19 = arith.constant 0 : index
      %34 = vector.load %arg5[%c0_18, %c0_19] : memref<8x64xf32, #tpu.memory_space<vmem>>, vector<8x64xf32>
      tpu.vector_store %arg5[%c0_18, %c0_19], %33 {strides = array<i32>} : memref<8x64xf32, #tpu.memory_space<vmem>>, vector<8x64xf32>,
      %35 = vector.extract_strided_slice %30 {offsets = [0, 64], sizes = [8, 64], strides = [1, 1]} : vector<8x192xf32> to vector<8x64xf32>
      %36 = arith.truncf %35 : vector<8x64xf32> to vector<8x64xbf16>
      %c0_20 = arith.constant 0 : index
      %c0_21 = arith.constant 0 : index
      %37 = vector.load %arg6[%c0_20, %c0_21] : memref<8x64xbf16, #tpu.memory_space<vmem>>, vector<8x64xbf16>
      tpu.vector_store %arg6[%c0_20, %c0_21], %36 {strides = array<i32>} : memref<8x64xbf16, #tpu.memory_space<vmem>>, vector<8x64xbf16>,
      %38 = vector.extract_strided_slice %30 {offsets = [0, 128], sizes = [8, 64], strides = [1, 1]} : vector<8x192xf32> to vector<8x64xf32>
      %39 = arith.truncf %38 : vector<8x64xf32> to vector<8x64xbf16>
      %c0_22 = arith.constant 0 : index
      %c0_23 = arith.constant 0 : index
      %40 = vector.load %arg7[%c0_22, %c0_23] : memref<8x64xbf16, #tpu.memory_space<vmem>>, vector<8x64xbf16>
      tpu.vector_store %arg7[%c0_22, %c0_23], %39 {strides = array<i32>} : memref<8x64xbf16, #tpu.memory_space<vmem>>, vector<8x64xbf16>,
    } else {
    }
    %c8_i32 = arith.constant 8 : i32
    %3 = arith.muli %arg1, %c8_i32 : i32
    %4 = tpu.assume_multiple %3, 8 : i32
    %5 = arith.index_cast %4 : i32 to index
    %c0 = arith.constant 0 : index
    %6 = vector.load %arg5[%5, %c0] : memref<8x64xf32, #tpu.memory_space<vmem>>, vector<8x64xf32>
    %7 = arith.truncf %6 : vector<8x64xf32> to vector<8x64xbf16>
    %c0_1 = arith.constant 0 : index
    %c0_2 = arith.constant 0 : index
    %8 = vector.load %arg6[%c0_1, %c0_2] : memref<8x64xbf16, #tpu.memory_space<vmem>>, vector<8x64xbf16>
    %c0_3 = arith.constant 0 : index
    %c0_4 = arith.constant 0 : index
    %9 = vector.load %arg7[%c0_3, %c0_4] : memref<8x64xbf16, #tpu.memory_space<vmem>>, vector<8x64xbf16>
    %cst = arith.constant dense<0.000000e+00> : vector<8x8xf32>
    %10 = tpu.matmul %7, %8, %cst {dimension_numbers = #tpu.dot_dimension_numbers<[1], [1], [0], [0], [0, 0, 1, 0], [], []>} : vector<8x64xbf16>, vector<8x64xbf16>, vector<8x8xf32> -> vector<8x8xf32>
    %cst_5 = arith.constant dense<0xFF800000> : vector<8xf32>
    %11 = vector.multi_reduction <maximumf>, %10, %cst_5 [1] : vector<8x8xf32> to vector<8xf32>
    %12 = vector.shape_cast %11 : vector<8xf32> to vector<8x1xf32>
    %13 = vector.broadcast %12 : vector<8x1xf32> to vector<8x8xf32>
    %14 = arith.subf %10, %13 : vector<8x8xf32>
    %15 = math.exp %14 : vector<8x8xf32>
    %cst_6 = arith.constant dense<0.000000e+00> : vector<8xf32>
    %16 = vector.multi_reduction <add>, %15, %cst_6 [1] : vector<8x8xf32> to vector<8xf32>
    %17 = vector.shape_cast %16 : vector<8xf32> to vector<8x1xf32>
    %18 = arith.truncf %15 : vector<8x8xf32> to vector<8x8xbf16>
    %cst_7 = arith.constant dense<0.000000e+00> : vector<8x64xf32>
    %19 = tpu.matmul %18, %9, %cst_7 {dimension_numbers = #tpu.dot_dimension_numbers<[1], [0], [0], [1], [0, 0, 1, 1], [], []>} : vector<8x8xbf16>, vector<8x64xbf16>, vector<8x64xf32> -> vector<8x64xf32>
    %20 = tpu.reciprocal %17 {approx = true} : vector<8x1xf32> -> vector<8x1xf32>
    %21 = vector.broadcast %20 : vector<8x1xf32> to vector<8x64xf32>
    %22 = arith.mulf %19, %21 : vector<8x64xf32>
    %c0_8 = arith.constant 0 : index
    %c0_9 = arith.constant 0 : index
    %c0_10 = arith.constant 0 : index
    %23 = vector.load %arg4[%c0_8, %c0_9, %c0_10] : memref<1x8x64xf32, #tpu.memory_space<vmem>>, vector<1x8x64xf32>
    %24 = vector.shape_cast %23 : vector<1x8x64xf32> to vector<8x64xf32>
    %25 = vector.shape_cast %22 : vector<8x64xf32> to vector<1x8x64xf32>
    tpu.vector_store %arg4[%c0_8, %c0_9, %c0_10], %25 {strides = array<i32>} : memref<1x8x64xf32, #tpu.memory_space<vmem>>, vector<1x8x64xf32>,
    return
  }
  func.func @transform_0(%arg0: i32, %arg1: i32) -> (i32, i32, i32) {
    %c0_i32 = arith.constant 0 : i32
    %c0_i32_0 = arith.constant 0 : i32
    %c0_i32_1 = arith.constant 0 : i32
    return %arg0, %c0_i32, %c0_i32_0 : i32, i32, i32
  }
  func.func @transform_1(%arg0: i32, %arg1: i32) -> (i32, i32) {
    %c0_i32 = arith.constant 0 : i32
    %c0_i32_0 = arith.constant 0 : i32
    %c0_i32_1 = arith.constant 0 : i32
    return %c0_i32, %c0_i32_0 : i32, i32
  }
  func.func @transform_2(%arg0: i32, %arg1: i32) -> (i32, i32, i32) {
    %c0_i32 = arith.constant 0 : i32
    %c0_i32_0 = arith.constant 0 : i32
    return %arg0, %arg1, %c0_i32 : i32, i32, i32
  }
}

</mosaic_0001>

<bundles_post_ra>
// kernel: tpu_custom_call.1
= control target key start
LH: loop header
LB: loop body
LE: loop exit
PB: predicated region body
PF: predicated region fallthrough
CT: control target
= control target key end

     0   :  { %7 = vsyncpa [#allocation6], 0  ;;  %s1329_s0 = inlined_call_operand.vmem [shape: f32[2,8,384], index: 0, kind: input, shape index: {}]   ;;  %s1330_s1 = inlined_call_operand.vmem [shape: bf16[384,192], index: 1, kind: input, shape index: {}]   ;;  %s1331_s2 = inlined_call_operand.hbm [shape: f32[2,8,64], index: 2, kind: output, shape index: {}]  }
   0x1   :  { %9 = vsyncpa [#allocation6 + $0x1], 0  ;;  %s1063_s9 = smov 0   ;;  %s1065_s10 = smov 0  }
   0x2   :  { %s1067_s11 = smov 0   ;;  %s1069_s12 = smov 0  }
   0x3   :  { %s1071_s13 = smov 0   ;;  %s1073_s14 = smov 0  }
   0x4 LB: > { %s750_s15 = sadd.s32 4294967295, %s1041_s14   ;;  %s751_s16 = sadd.s32 4294967294, %s1041_s14   ;;  %s1041_s14 = sphi %s1073_s14, %s15_s14   ;;  %s1037_s13 = sphi %s1071_s13, %s1338_s13   ;;  %s1033_s12 = sphi %s1069_s12, %s1337_s12   ;;  %s1029_s11 = sphi %s1067_s11, %s1336_s11   ;;  %s1025_s10 = sphi %s1065_s10, %s1335_s10   ;;  %s1021_s9 = sphi %s1063_s9, %s1334_s9  }
   0x5   : > { %s27_s17 = sadd.s32 1, %s1037_s13  ;;  %s83_s18 = sadd.s32 1, %s1029_s11 }
   0x6   : > { %p29_p0 = scmp.ge.s32.totalorder %s27_s17, 2  ;;  %p93_p1 = scmp.ne.s32.totalorder %s1029_s11, %s1025_s10 }
   0x7   : > { %p94_p2 = scmp.eq.s32.totalorder %s750_s15, 1  ;;  %p99_p3 = scmp.ne.s32.totalorder %s1025_s10, %s1021_s9 }
   0x8   : > { %s1340_s17 = smov (%p29_p0, %s27_s17), 0  ;;  %p100_p5 = scmp.eq.s32.totalorder %s751_s16, 1 }
   0x9   : > { %p1103_p4 = por %p94_p2, %p93_p1  ;;  %s78_s20 = ssub.s32 %s1037_s13, %s1340_s17 }
   0xa   : > { %p754_p6 = scmp.ge.s32.totalorder %s1041_s14, 1  ;;  %p81_p7 = scmp.eq.s32.totalorder %s78_s20, 0 }
   0xb   : > { %p1110_p8 = por %p100_p5, %p99_p3  ;;  %p129_p9 = scmp.lt.s32.totalorder %s1041_s14, 3 }
   0xc   : > { %s1116_s22 = scalar_select %p81_p7, %s1029_s11, %s83_s18  }
   0xd   : > { %p130_p10 = pnand %p754_p6, %p129_p9 }
   0xe   : > { %p151_p11 = scmp.lt.s32.totalorder (!%p130_p10), %s1033_s12, 1  ;;  %s148_s8 = sand.u32 (!%p130_p10), 1, %s1025_s10  }
   0xf   : > { %133 = sbr.rel (%p130_p10) target bundleno = 974 (0x3ce), region = 28  ;;  %s755_s15 = sshll.u32 (!%p130_p10), %s148_s8, 3 }
  0x10   : > { %s809_s16 = sshll.u32 (!%p130_p10), %s1033_s12, 7  ;;  %s150_s18 = scalar_lea.vmem (!%p130_p10), [#allocation5], %s755_s15 }
  0x11   : > { %s680_s20 = sshll.u32 (!%p130_p10), %s150_s18, 4  ;;  %s1282_s25 = scalar_lea.hbm (!%p130_p10), %s1331_s2, %s809_s16  ;;  %s1284_s20 = int_to_ptr.vmem [resolvable:$true] %s680_s20 }
  0x12   : > { %s965_s26 = scalar_lea.vmem (!%p130_p10), %s1284_s20, 128  ;;  %s1047_s27 = smov (!%p130_p10), [#allocation5]  }
  0x13   : > { %p966_p12 = scmp.ne.s32.totalorder (!%p130_p10), %s1284_s20, %s965_s26  ;;  %s969_s28 = sshll.u32 (!%p130_p10), %s1047_s27, 4  ;;  %s970_s28 = int_to_ptr.vmem [resolvable:$false] %s969_s28 }
  0x14   : > { %v889_v0 = vld [vmem:[%s1330_s1 + $0x74] ss:$8 sps:$4 sm:$0xff]   ;;  %v891_v1 = vld [vmem:[%s1330_s1 + $0x70] ss:$8 sps:$4 sm:$0xff]   ;;  %v1043_v2 = vmov 0   ;;  %s152_s5 = scalar_select %p151_p11, %s1033_s12, 1 }
  0x15   : > { %528 = vmatprep.mubr.bf16.mxu1 %v1043_v2  ;;  %455 = vmatprep.subr.bf16.mxu0 %v889_v0  ;;  %v892_v3 = vld [vmem:[%s1330_s1 + $0x64] ss:$8 sps:$4 sm:$0xff]   ;;  %v894_v4 = vld [vmem:[%s1330_s1 + $0x60] ss:$8 sps:$4 sm:$0xff]   ;;  %v895_v5 = vld [vmem:[%s1330_s1 + $0x54] ss:$8 sps:$4 sm:$0xff]   ;;  %p967_p13 = pnand %p966_p12, %p1103_p4  ;;  %p972_p1 = scmp.lt.s32.totalorder %s1284_s20, %s970_s28 }
  0x16   : > { %456 = vmatpush1.bf16.msra.mxu0 %v891_v1  ;;  %v897_v6 = vld [vmem:[%s1330_s1 + $0x50] ss:$8 sps:$4 sm:$0xff]   ;;  %v898_v7 = vld [vmem:[%s1330_s1 + $0x44] ss:$8 sps:$4 sm:$0xff]   ;;  %v910_v8 = vld [vmem:[%s1330_s1 + $0x174] ss:$8 sps:$4 sm:$0xff]  }
  0x17   : > { %457 = vmatprep.subr.bf16.mxu0 %v892_v3  ;;  %v912_v9 = vld [vmem:[%s1330_s1 + $0x170] ss:$8 sps:$4 sm:$0xff]   ;;  %v900_v10 = vld [vmem:[%s1330_s1 + $0x40] ss:$8 sps:$4 sm:$0xff]   ;;  %v901_v11 = vld [vmem:[%s1330_s1 + $0x34] ss:$8 sps:$4 sm:$0xff]   ;;  %496 = vmatprep.subr.bf16.mxu1 %v910_v8  ;;  %p968_p0 = pneg %p967_p13 }
  0x18   : > { %v916_v12 = vld [vmem:[%s1330_s1 + $0x164] ss:$8 sps:$4 sm:$0xff]   ;;  %497 = vmatpush1.bf16.msra.mxu1 %v912_v9  ;;  %v918_v13 = vld [vmem:[%s1330_s1 + $0x160] ss:$8 sps:$4 sm:$0xff]   ;;  %v903_v14 = vld [vmem:[%s1330_s1 + $0x30] ss:$8 sps:$4 sm:$0xff]  }
  0x19   : > { %498 = vmatprep.subr.bf16.mxu1 %v916_v12  ;;  %v922_v15 = vld [vmem:[%s1330_s1 + $0x154] ss:$8 sps:$4 sm:$0xff]   ;;  %v904_v16 = vld [vmem:[%s1330_s1 + $0x24] ss:$8 sps:$4 sm:$0xff]   ;;  %v924_v17 = vld [vmem:[%s1330_s1 + $0x150] ss:$8 sps:$4 sm:$0xff]  }
  0x1a   : > { %458 = vmatpush1.bf16.msra.mxu0 %v894_v4  ;;  %v928_v18 = vld [vmem:[%s1330_s1 + $0x144] ss:$8 sps:$4 sm:$0xff]   ;;  %v906_v19 = vld [vmem:[%s1330_s1 + $0x20] ss:$8 sps:$4 sm:$0xff]   ;;  %v907_v20 = vld [vmem:[%s1330_s1 + $0x14] ss:$8 sps:$4 sm:$0xff]  }
  0x1b   : > { %459 = vmatprep.subr.bf16.mxu0 %v895_v5  ;;  %v930_v21 = vld [vmem:[%s1330_s1 + $0x140] ss:$8 sps:$4 sm:$0xff]   ;;  %v934_v22 = vld [vmem:[%s1330_s1 + $0x134] ss:$8 sps:$4 sm:$0xff]   ;;  %v909_v23 = vld [vmem:[%s1330_s1 + $0x10] ss:$8 sps:$4 sm:$0xff]  }
  0x1c   : > { %499 = vmatpush1.bf16.msra.mxu1 %v918_v13  ;;  %v913_v24 = vld [vmem:[%s1330_s1 + $0x4] ss:$8 sps:$4 sm:$0xff]   ;;  %v936_v25 = vld [vmem:[%s1330_s1 + $0x130] ss:$8 sps:$4 sm:$0xff]   ;;  %v915_v27 = vld [vmem:[%s1330_s1] ss:$8 sps:$4 sm:$0xff]  }
  0x1d   : > { %500 = vmatprep.subr.bf16.mxu1 %v922_v15  ;;  %v940_v26 = vld [vmem:[%s1330_s1 + $0x124] ss:$8 sps:$4 sm:$0xff]   ;;  %s829_s24 = smul.u32 24, %s152_s5  ;;  %v919_v28 = vld [vmem:[%s1330_s1 + $0xf4] ss:$8 sps:$4 sm:$0xff]   ;;  %v1044_v59 = vmov 0.0  }
  0x1e   : > { %460 = vmatpush1.bf16.msra.mxu0 %v897_v6  ;;  %v942_v29 = vld [vmem:[%s1330_s1 + $0x120] ss:$8 sps:$4 sm:$0xff]   ;;  %v946_v30 = vld [vmem:[%s1330_s1 + $0x114] ss:$8 sps:$4 sm:$0xff]   ;;  %v921_v31 = vld [vmem:[%s1330_s1 + $0xf0] ss:$8 sps:$4 sm:$0xff]  }
  0x1f   : > { %461 = vmatprep.subr.bf16.mxu0 %v898_v7  ;;  %s1216_s7 = scalar_lea.vmem %s1329_s0, %s829_s24  ;;  %v925_v32 = vld [vmem:[%s1330_s1 + $0xe4] ss:$8 sps:$4 sm:$0xff]   ;;  %v948_v34 = vld [vmem:[%s1330_s1 + $0x110] ss:$8 sps:$4 sm:$0xff]   ;;  %v927_v37 = vld [vmem:[%s1330_s1 + $0xe0] ss:$8 sps:$4 sm:$0xff]  }
  0x20   : > { %501 = vmatpush1.bf16.msra.mxu1 %v924_v17  ;;  %v162_v33 = vld [vmem:[%s1216_s7 + $0x8] sm:$0xff]  ;;  %v931_v38 = vld [vmem:[%s1330_s1 + $0xd4] ss:$8 sps:$4 sm:$0xff]   ;;  %v933_v41 = vld [vmem:[%s1330_s1 + $0xd0] ss:$8 sps:$4 sm:$0xff]   ;;  %vm538_vm0 = vcmask 523264  }
  0x21   : > { %502 = vmatprep.subr.bf16.mxu1 %v928_v18  ;;  %v165_v35 = vpack.c.bf16 %v162_v33, %v162_v33  ;;  %v952_v36 = vld [vmem:[%s1330_s1 + $0x104] ss:$8 sps:$4 sm:$0xff]   ;;  %v954_v39 = vld [vmem:[%s1330_s1 + $0x100] ss:$8 sps:$4 sm:$0xff]   ;;  %v163_v40 = vld [vmem:[%s1216_s7 + $0x10] sm:$0xff]  ;;  %vm1045_vm1 = vmmov 0  }
  0x22   : > { %462 = vmatpush1.bf16.msra.mxu0 %v900_v10  ;;  %v937_v42 = vld [vmem:[%s1330_s1 + $0xc4] ss:$8 sps:$4 sm:$0xff]   ;;  %v166_v43 = vpack.c.bf16 %v163_v40, %v163_v40  ;;  %v939_v44 = vld [vmem:[%s1330_s1 + $0xc0] ss:$8 sps:$4 sm:$0xff]   ;;  %v943_v45 = vld [vmem:[%s1330_s1 + $0xb4] ss:$8 sps:$4 sm:$0xff]  }
  0x23   : > { %463 = vmatprep.subr.bf16.mxu0 %v901_v11  ;;  %487 = vmatprep.mubr.bf16.mxu0 %v165_v35  ;;  %v945_v46 = vld [vmem:[%s1330_s1 + $0xb0] ss:$8 sps:$4 sm:$0xff]   ;;  %v949_v47 = vld [vmem:[%s1330_s1 + $0xa4] ss:$8 sps:$4 sm:$0xff]   ;;  %v951_v48 = vld [vmem:[%s1330_s1 + $0xa0] ss:$8 sps:$4 sm:$0xff]  }
  0x24   : > { %503 = vmatpush1.bf16.msra.mxu1 %v930_v21  ;;  %v955_v49 = vld [vmem:[%s1330_s1 + $0x94] ss:$8 sps:$4 sm:$0xff]   ;;  %v957_v50 = vld [vmem:[%s1330_s1 + $0x90] ss:$8 sps:$4 sm:$0xff]   ;;  %v958_v51 = vld [vmem:[%s1330_s1 + $0x84] ss:$8 sps:$4 sm:$0xff]  }
  0x25   : > { %504 = vmatprep.subr.bf16.mxu1 %v934_v22  ;;  %v960_v52 = vld [vmem:[%s1330_s1 + $0x80] ss:$8 sps:$4 sm:$0xff]   ;;  %vm547_vm2 = vcmask 519168   ;;  %vm618_vm3 = vcmask 1043456   ;;  %vm604_vm4 = vcmask 64512   ;;  %s666_s12 = scalar_lea.sflag [#allocation6], %s148_s8 }
  0x26   : > { %464 = vmatpush1.bf16.msra.mxu0 %v903_v14  ;;  %v161_v53 = vld [vmem:[%s1216_s7] sm:$0xff]  ;;  %s1046_s7 = smov 64   ;;  %s971_s29 = scalar_lea.vmem %s970_s28, 256 }
  0x27   : > { %465 = vmatprep.subr.bf16.mxu0 %v904_v16  ;;  %v164_v54 = vpack.c.bf16 %v161_v53, %v161_v53  ;;  %p973_p2 = scmp.lt.s32.totalorder %s971_s29, %s965_s26 }
  0x28   : > { %505 = vmatpush1.bf16.msra.mxu1 %v936_v25 }
  0x29   : > { %506 = vmatprep.subr.bf16.mxu1 %v940_v26  ;;  %p974_p3 = por %p973_p2, %p972_p1 }
  0x2a   : > { %466 = vmatpush1.bf16.msra.mxu0 %v906_v19 }
  0x2b   : > { %467 = vmatprep.subr.bf16.mxu0 %v907_v20  ;;  %p975_p5 = pnand %p974_p3, %p968_p0 }
  0x2c   : > { %507 = vmatpush1.bf16.msra.mxu1 %v942_v29 }
  0x2d   : > { %508 = vmatprep.subr.bf16.mxu1 %v946_v30 }
  0x2e   : > { %468 = vmatpush1.bf16.msra.mxu0 %v909_v23 }
  0x2f   : > { %469 = vmatprep.subr.bf16.mxu0 %v913_v24 }
  0x30   : > { %509 = vmatpush1.bf16.msra.mxu1 %v948_v34 }
  0x31   : > { %510 = vmatprep.subr.bf16.mxu1 %v952_v36 }
  0x32   : > { %470 = vmatpush1.bf16.msra.mxu0 %v915_v27 }
  0x33   : > { %471 = vmatprep.subr.bf16.mxu0 %v919_v28 }
  0x34   : > { %511 = vmatpush1.bf16.msra.mxu1 %v954_v39 }
  0x35   : > { %817 = vmatprep.subr.bf16.mxu1 %v1044_v59 }
  0x36   : > { %472 = vmatpush2.bf16.msra.mxu0 %v921_v31 }
  0x37   : > { %473 = vmatprep.subr.bf16.mxu0 %v925_v32  ;;  %529 = vmatmul.mubr.bf16.vlgmr.msra.gmra.mxu1 %v166_v43 }
  0x38   : > { %819 = vmatprep.mubr.msk.bf16.mxu1 %vm1045_vm1, %v1044_v59 }
  0x3a   : > { %474 = vmatpush2.bf16.msra.mxu0 %v927_v37 }
  0x3b   : > { %475 = vmatprep.subr.bf16.mxu0 %v931_v38 }
  0x3e   : > { %476 = vmatpush2.bf16.msra.mxu0 %v933_v41 }
  0x3f   : > { %477 = vmatprep.subr.bf16.mxu0 %v937_v42 }
  0x42   : > { %478 = vmatpush2.bf16.msra.mxu0 %v939_v44 }
  0x43   : > { %479 = vmatprep.subr.bf16.mxu0 %v943_v45 }
  0x46   : > { %480 = vmatpush2.bf16.msra.mxu0 %v945_v46 }
  0x47   : > { %481 = vmatprep.subr.bf16.mxu0 %v949_v47 }
  0x4a   : > { %482 = vmatpush2.bf16.msra.mxu0 %v951_v48 }
  0x4b   : > { %483 = vmatprep.subr.bf16.mxu0 %v955_v49 }
  0x4e   : > { %484 = vmatpush2.bf16.msra.mxu0 %v957_v50 }
  0x4f   : > { %485 = vmatprep.subr.bf16.mxu0 %v958_v51 }
  0x52   : > { %486 = vmatpush2.bf16.msra.mxu0 %v960_v52 }
  0x55   : > { %488 = vmatmul.mubr.bf16.vlgmr.msra.gmra.mxu0 %v164_v54 }
  0xf7   : > { %v530_v55 = vpop.f32.mrf.mxu1 }
  0xf9   : > { %v532_v56 = vpop.f32.mrf.mxu1 }
  0xfb   : > { %v534_v57 = vpop.f32.mrf.mxu1 }
  0xfd   : > { %v535_v58 = vpop.f32.mrf.mxu1 }
 0x115   : > { %v489_v60 = vpop.f32.mrf.mxu0 }
 0x116   : > { %v531_v61 = vadd.f32 %v530_v55, %v489_v60 }
 0x117   : > { %v491_v62 = vpop.f32.mrf.mxu0 }
 0x118   : > { %v537_v63 = vmul.f32 0.05103104, %v531_v61  ;;  %v533_v0 = vadd.f32 %v532_v56, %v491_v62  ;;  %v812_v1 = vpack.c.bf16 %v531_v61, %v531_v61 }
 0x119   : > { %v493_v2 = vpop.f32.mrf.mxu0 }
 0x11a   : > { %539 = vst.msk [vmem:[#allocation2] sm:$0xff] %vm538_vm0, %v537_v63  ;;  %v549_v3 = vpack.c.bf16 %v533_v0, %v533_v0  ;;  %544 = vrot.lane.b32.xlu0 %v812_v1, %s1046_s7 }
 0x11b   : > { %v494_v4 = vpop.f32.mrf.mxu0 }
 0x11c   : > { %550 = vst.msk [vmem:[#allocation4] sm:$0xf] %vm547_vm2, %v549_v3 }
 0x121   : > { %v553_v8 = vld [vmem:[#allocation2] sm:$0xff] }
 0x122   : > { %v554_v10 = vpack.c.bf16 %v553_v8, %v553_v8 }
 0x123   : > { %v556_v9 = vld [vmem:[#allocation4] sm:$0xf] }
 0x124   : > { %v620_v11 = vsel %vm618_vm3, %v556_v9, 0 }
 0x18c   : > { %v545_v5 = vpop.permute.xlu0 %544 }
 0x18d   : > { %548 = vst.msk [vmem:[#allocation3] sm:$0xf] %vm547_vm2, %v545_v5 }
 0x194   : > { %v555_v6 = vld [vmem:[#allocation3] sm:$0xf] }
 0x195   : > { %v562_v7 = vsel %vm538_vm0, %v555_v6, 0 }
 0x196   : > { %818 = vmatpush3.bf16.xpose.msra.mxu1 %v562_v7 }
 0x197   : > { %823 = vmatprep.subr.bf16.mxu1 %v1044_v59 }
 0x19d   : > { %820 = vmatmul.mubr.msk.bf16.vlgmr.msra.gmra.mxu1 %vm538_vm0, %v554_v10 }
 0x19e   : > { %824 = vmatpush3.bf16.msra.mxu1 %v620_v11  ;;  %825 = vmatprep.mubr.msk.bf16.mxu1 %vm1045_vm1, %v1044_v59 }
 0x25d   : > { %v598_v12 = vpop.f32.mrf.mxu1 }
 0x25e   : > { %v605_v13 = vsel %vm604_vm4, %v598_v12, -inf }
 0x25f   : > { %606 = vmax.xlane.f32.xlu0 %v605_v13  ;;  %v821_v14 = vpop.f32.mrf.mxu1 }
 0x261   : > { %v601_v15 = vpop.f32.mrf.mxu1 }
 0x263   : > { %v822_v16 = vpop.f32.mrf.mxu1 }
 0x2e8   : > { %v607_v17 = vpop.xlane.xlu0 %606 }
 0x2e9   : > { %v608_v18 = vsub.f32 %v598_v12, %v607_v17 }
 0x2eb   : > { %v609_v19 = vmul.f32 1.442695, %v608_v18 }
 0x2ed   : > { %961 = vpow2.f32 %v609_v19 }
 0x2fa   : > { %v962_v20 = vpop.eup %961 }
 0x2fb   : > { %v611_v21 = vsel %vm604_vm4, %v962_v20, 0.0  ;;  %v614_v22 = vpack.c.bf16 %v962_v20, %v962_v20 }
 0x2fc   : > { %612 = vadd.xlane.f32.xlu1 %v611_v21 }
 0x2fd   : > { %826 = vmatmul.mubr.msk.bf16.vlgmr.msra.gmra.mxu1 %vm604_vm4, %v614_v22 }
 0x385   : > { %v613_v23 = vpop.xlane.xlu1 %612 }
 0x386   : > { %963 = vrcp.f32 %v613_v23 }
 0x393   : > { %v964_v24 = vpop.eup %963 }
 0x3bd   : > { %v656_v25 = vpop.f32.mrf.mxu1 }
 0x3be   : > { %v663_v26 = vmul.f32 %v964_v24, %v656_v25 }
 0x3bf   : > { %v827_v27 = vpop.f32.mrf.mxu1 }
 0x3c0   : > { %664 = vst.msk [vmem:[%s150_s18] sm:$0xff] %vm538_vm0, %v663_v26 }
 0x3c1   : > { %v659_v28 = vpop.f32.mrf.mxu1 }
 0x3c2   : > { %978 = shalt.err (!%p975_p5)
}
 0x3c3   : > { %s979_s30 = scalar_lea.hbm %s1282_s25, 128  ;;  %s983_s5 = scalar_lea.hbm %s1331_s2, 256 }
 0x3c4   : > { %p980_p6 = scmp.ne.s32.totalorder %s1282_s25, %s979_s30  ;;  %p984_p10 = scmp.lt.s32.totalorder %s1282_s25, %s1331_s2 }
 0x3c5   : > { %p985_p11 = scmp.lt.s32.totalorder %s983_s5, %s979_s30 }
 0x3c6   : > { %p981_p7 = pnand %p980_p6, %p1103_p4 }
 0x3c7   : > { %p986_p12 = por %p985_p11, %p984_p10 }
 0x3c8   : > { %p982_p9 = pneg %p981_p7 }
 0x3ca   : > { %p987_p13 = pnand %p986_p12, %p982_p9 }
 0x3cc   : > { %990 = shalt.err (!%p987_p13)
}
 0x3cd   : > { %830 = dma.vmem_to_hbm [thread:$0]  (%p1103_p4), %s1284_s20, 128, %s1282_s25, %s666_s12   ;;  %v828_v29 = vpop.f32.mrf.mxu1 }
 0x3ce PF: > { %p836_p0 = scmp.ge.s32.totalorder %s1041_s14, 2  ;;  %s692_s8 = sand.u32 1, %s1021_s9  }
 0x3cf   : > { %s693_s15 = scalar_lea.sflag [#allocation6], %s692_s8 }
 0x3d0   : > { %p833_p1 = pnand %p836_p0, %p1110_p8 }
 0x3d2   : > { %p834_p2 = pneg %p833_p1 }
 0x3d4   : > { %1016 = dma.done.wait (%p834_p2), %s693_s15, 128  }
 0x3d5   : > { %1018 = vsyncadd (%p834_p2), %s693_s15, 4294967168  ;;  %s15_s14 = sadd.s32 1, %s1041_s14   ;;  %s1334_s9 = smov %s1025_s10 }
 0x3d6   : > { %p12_p3 = scmp.ge.s32.totalorder %s15_s14, 4   ;;  %s1335_s10 = smov %s1029_s11 }
 0x3d7   : > { %s1336_s11 = smov %s1116_s22  ;;  %s1337_s12 = smov %s1037_s13 }
 0x3d8   : > { %s1338_s13 = smov %s1340_s17  ;;  %14 = sbr.rel (!%p12_p3) target bundleno = 4 (0x4), region = 68 }
 0x3dd   :  { %698 = vsyncpa [#allocation6], 1 }
 0x3de   :  { %700 = vsyncpa [#allocation6 + $0x1], 1 }

</bundles_post_ra>
